<compile_context>
chip_gen: v7x
topology: tpu7x:2x2x1
jax: 0.10.0
libtpu: 0.0.40
codegen_flags: <defaults>
</compile_context>

<pallas_src>
import functools

import numpy as np
import jax
import jax.numpy as jnp
from jax.experimental import pallas as pl
from jax.experimental.pallas import tpu as pltpu


_LANE_WIDTH = 1024        # lane-dense last dim (8 x 128 lanes -> unmasked, wide stores/DMAs)
_MAX_BLOCK_ROWS = 512     # 512 x 1024 f32 = 2 MiB per block
_SUBLANE = 8


# ----------------------------------------------------------------------------
# Pallas kernels
# ----------------------------------------------------------------------------
def ema_update_kernel(s_ref, p_ref, o_ref, *, decay):
    # s_new = decay * s + (1 - decay) * p   (elementwise, VPU, HBM-bandwidth bound)
    p = p_ref[...].astype(jnp.float32)
    o_ref[...] = decay * s_ref[...] + (1.0 - decay) * p


def linear_kernel(x_ref, w_ref, b_ref, o_ref):
    # y = x @ W + b  (MXU matmul, f32 accumulate, broadcast bias add)
    # NOTE: inputs kept f32 to preserve the tight numerical check against the f32 reference;
    # a bf16 cast here would halve the weight DMA at ~1e-3 relative error.
    o_ref[...] = (
        jnp.dot(x_ref[...], w_ref[...], preferred_element_type=jnp.float32)
        + b_ref[...]
    )


# ----------------------------------------------------------------------------
# Packed-parameter helpers (shadow AND live params live permanently in this layout)
# ----------------------------------------------------------------------------
def _round_up(x, m):
    return ((x + m - 1) // m) * m


def _sublane_multiple(dtype):
    # f32 -> 8 rows, bf16 -> 16, int8/fp8 -> 32 (sub-32-bit dtypes pack along sublanes).
    itemsize = int(np.dtype(dtype).itemsize)
    return max(_SUBLANE, _SUBLANE * (4 // max(1, itemsize)))


def _packing_geometry(n_elements, sub):
    """Return (rows, block_rows, grid_len) for the packed (rows, 1024) layout.

    rows is padded only to a multiple of `sub` (plus at most one extra block of padding);
    grid_len >= 2 whenever possible so v7x's two TensorCores both stream.
    """
    min_rows = _round_up(max(1, -(-n_elements // _LANE_WIDTH)), sub)
    if min_rows <= sub:
        return min_rows, min_rows, 1
    n_blocks = max(2, -(-min_rows // _MAX_BLOCK_ROWS))
    block_rows = _round_up(-(-min_rows // n_blocks), sub)
    rows = block_rows * n_blocks
    return rows, block_rows, n_blocks


def _pack_params(params, rows, dtype):
    """Flatten + concat + zero-pad params into one (rows, 1024) buffer of `dtype`."""
    flat = jnp.concatenate([jnp.ravel(p).astype(dtype) for p in params])
    pad = rows * _LANE_WIDTH - flat.shape[0]
    flat = jnp.pad(flat, (0, pad))
    return flat.reshape(rows, _LANE_WIDTH)


def _unpack_params(buf2d, templates):
    flat = buf2d.reshape(-1)
    out = []
    off = 0
    for shape, dtype, size in templates:
        out.append(flat[off:off + size].reshape(shape).astype(dtype))
        off += size
    return out


# ----------------------------------------------------------------------------
# EMA update: Pallas kernel over the packed buffers (no repacking per update)
# ----------------------------------------------------------------------------
def _ema_update_packed(shadow2d, live2d, decay, block_rows, grid_len):
    rows = shadow2d.shape[0]
    s_bytes = rows * _LANE_WIDTH * 4
    p_bytes = rows * _LANE_WIDTH * int(np.dtype(live2d.dtype).itemsize)

    kernel = functools.partial(ema_update_kernel, decay=float(decay))
    return pl.pallas_call(
        kernel,
        out_shape=jax.ShapeDtypeStruct((rows, _LANE_WIDTH), jnp.float32),
        grid_spec=pltpu.PrefetchScalarGridSpec(
            num_scalar_prefetch=0,
            grid=(grid_len,),
            in_specs=[
                pl.BlockSpec((block_rows, _LANE_WIDTH), lambda i: (i, 0)),
                pl.BlockSpec((block_rows, _LANE_WIDTH), lambda i: (i, 0)),
            ],
            out_specs=pl.BlockSpec((block_rows, _LANE_WIDTH), lambda i: (i, 0)),
        ),
        compiler_params=pltpu.CompilerParams(
            dimension_semantics=("parallel",),
        ),
        # Update the shadow buffer in place (shadow input -> output).
        input_output_aliases={0: 0},
        cost_estimate=pl.CostEstimate(
            flops=3 * rows * _LANE_WIDTH,
            transcendentals=0,
            bytes_accessed=2 * s_bytes + p_bytes,   # read s, read p, write s
        ),
    )(shadow2d, live2d)


_ema_update_packed_jit = jax.jit(
    _ema_update_packed, static_argnums=(2, 3, 4), donate_argnums=(0,)
)


# ----------------------------------------------------------------------------
# Wrapped model forward: Pallas linear layer (full-array blocks, lane-dense output)
# ----------------------------------------------------------------------------
def _linear_forward(x2d, w_p, b_p):
    """(N, D) @ (D, Fp) + (1, Fp) -> (N, Fp).  Full-array blocks; no x padding needed."""
    n, d = x2d.shape
    fp = w_p.shape[1]
    return pl.pallas_call(
        linear_kernel,
        out_shape=jax.ShapeDtypeStruct((n, fp), jnp.float32),
        grid_spec=pltpu.PrefetchScalarGridSpec(
            num_scalar_prefetch=0,
            grid=(1,),
            in_specs=[
                pl.BlockSpec((n, d), lambda i: (0, 0)),
                pl.BlockSpec((d, fp), lambda i: (0, 0)),
                pl.BlockSpec((1, fp), lambda i: (0, 0)),
            ],
            out_specs=pl.BlockSpec((n, fp), lambda i: (0, 0)),
        ),
    )(x2d, w_p, b_p)


_linear_forward_jit = jax.jit(_linear_forward)


@functools.partial(jax.jit, static_argnums=(1, 2))
def _build_padded_linear(packed2d, d, f):
    """Slice the (contiguous) weight/bias out of a packed buffer and pad F -> 128 lanes."""
    flat = packed2d.reshape(-1).astype(jnp.float32)
    w = flat[: d * f].reshape(d, f)
    b = flat[d * f: d * f + f].reshape(1, f)
    fp = _round_up(f, 128)
    w_p = jnp.zeros((d, fp), jnp.float32).at[:, :f].set(w)
    b_p = jnp.zeros((1, fp), jnp.float32).at[:, :f].set(b)
    return w_p, b_p


# ----------------------------------------------------------------------------
# EMA module (functional JAX analogue of the PyTorch EMA wrapper)
# ----------------------------------------------------------------------------
class EMA:
    """EMA over the parameters of a tiny Linear model on flattened NCHW input."""
    # TODO(synk): the PyTorch module wraps an *arbitrary* nn.Module; only a Linear
    # demo model (weight (D,F), bias (F,)) is implemented here as the wrapped forward.

    def __init__(self, model_params, decay=0.9999):
        self.decay = float(decay)
        params = [jnp.asarray(p) for p in model_params]
        self._templates = [(p.shape, p.dtype, int(p.size)) for p in params]
        total = sum(t[2] for t in self._templates)

        dtypes = {jnp.dtype(t[1]) for t in self._templates}
        self._live_dtype = dtypes.pop() if len(dtypes) == 1 else jnp.dtype(jnp.float32)

        sub = max(_sublane_multiple(jnp.float32), _sublane_multiple(self._live_dtype))
        self._rows, self._block_rows, self._grid = _packing_geometry(total, sub)

        # Live params mirror: packed once here / at the optimizer-step boundary (setter),
        # never repacked inside update().
        self._live_packed = _pack_params(params, self._rows, self._live_dtype)
        # Shadow params: permanently packed f32.
        self._shadow_packed = _pack_params(params, self._rows, jnp.float32)

        self.collected_params = None          # packed snapshot during forward()
        self._padded_cache = None             # (src_packed_buf, w_p, b_p)

    # ----- live / shadow parameter views ------------------------------------
    @property
    def model_params(self):
        """Unpacked view of the live params (materialized on demand)."""
        return _unpack_params(self._live_packed, self._templates)

    @model_params.setter
    def model_params(self, params):
        """Optimizer-step boundary: repack the live mirror once (not per update)."""
        params = [jnp.asarray(p) for p in params]
        self._live_packed = _pack_params(params, self._rows, self._live_dtype)

    @property
    def shadow_params(self):
        """Unpacked view of the shadow (EMA) params (materialized on demand)."""
        return _unpack_params(self._shadow_packed, self._templates)

    # ----- EMA update --------------------------------------------------------
    def update(self):
        """s <- decay * s + (1 - decay) * p   (Pallas kernel, in-place on packed shadow)."""
        self._shadow_packed = _ema_update_packed_jit(
            self._shadow_packed, self._live_packed, self.decay,
            self._block_rows, self._grid,
        )

    # ----- copy_to / forward -------------------------------------------------
    def copy_to(self):
        """Copies the EMA parameters to the live model params (JAX arrays are immutable,
        so this is a cheap reference/cast assignment rather than a data copy)."""
        if jnp.dtype(self._live_dtype) == jnp.dtype(jnp.float32):
            self._live_packed = self._shadow_packed
        else:
            self._live_packed = self._shadow_packed.astype(self._live_dtype)

    def _padded_linear_params(self, packed):
        """Padded (w_p, b_p) built from a packed buffer, cached on buffer identity."""
        cache = self._padded_cache
        if cache is None or cache[0] is not packed:
            d, f = self._templates[0][0]
            w_p, b_p = _build_padded_linear(packed, int(d), int(f))
            self._padded_cache = (packed, w_p, b_p)
            cache = self._padded_cache
        return cache[1], cache[2]

    def _run_model(self, x_nchw):
        n = x_nchw.shape[0]
        x2d = x_nchw.reshape(n, -1).astype(jnp.float32)
        w_p, b_p = self._padded_linear_params(self._live_packed)
        f = int(self._templates[0][0][1])
        out_p = _linear_forward_jit(x2d, w_p, b_p)
        return out_p[:, :f]

    def forward(self, x_nchw):
        """Run the wrapped model with EMA params, then restore the originals."""
        # collected_params = [param.clone() for param in model.parameters()]
        self.collected_params = self._live_packed
        # copy_to(model): model params <- shadow params
        self.copy_to()
        # output = model(x): flatten NCHW -> (N, C*H*W), Pallas linear kernel
        out = self._run_model(x_nchw)
        # restore original model params
        self._live_packed = self.collected_params
        return out

    __call__ = forward


# ----------------------------------------------------------------------------
# Demo / correctness check
# ----------------------------------------------------------------------------
if __name__ == "__main__":
    key = jax.random.PRNGKey(0)
    kx, kw, kb, kg = jax.random.split(key, 4)

    # Wrapped model: Linear(C*H*W=1024 -> 32) on flattened NCHW input.
    N, C, H, W = 2, 4, 16, 16
    D, F = C * H * W, 32
    x = jax.random.normal(kx, (N, C, H, W), dtype=jnp.float32)
    w0 = jax.random.normal(kw, (D, F), dtype=jnp.float32) * 0.02
    b0 = jax.random.normal(kb, (F,), dtype=jnp.float32) * 0.02

    ema = EMA([w0, b0], decay=0.9999)

    # Simulate one optimizer step changing the live model params (packs the mirror once) ...
    w1 = w0 + 0.01 * jax.random.normal(kg, (D, F), dtype=jnp.float32)
    b1 = b0 + 0.01
    ema.model_params = [w1, b1]

    # ... then two EMA updates with NO repacking in between.
    ema.update()
    ema.update()

    # Reference EMA recurrence (plain JAX, f32).
    ref_w, ref_b = w0, b0
    for _ in range(2):
        ref_w = 0.9999 * ref_w + 0.0001 * w1
        ref_b = 0.9999 * ref_b + 0.0001 * b1

    shadow_w, shadow_b = ema.shadow_params
    assert jnp.allclose(shadow_w, ref_w, atol=1e-6)
    assert jnp.allclose(shadow_b, ref_b, atol=1e-6)

    # Forward with EMA params (Pallas matmul), originals restored afterwards.
    out = ema(x)
    out = jax.block_until_ready(out)

    ref_out = x.reshape(N, -1) @ ref_w + ref_b
    assert out.shape == (N, F)
    assert jnp.allclose(out, ref_out, atol=1e-4, rtol=1e-4)
    assert jnp.allclose(ema.model_params[0], w1)  # live params restored
    assert jnp.allclose(ema.model_params[1], b1)

    print("KERNEL_OK")
</pallas_src>

<mosaic_0001>
module attributes {stable_mosaic.version = 11 : i64} {
  func.func @ema_update_kernel(%arg0: i32, %arg1: memref<24x1024xf32, #tpu.memory_space<vmem>>, %arg2: memref<24x1024xf32, #tpu.memory_space<vmem>>, %arg3: memref<24x1024xf32, #tpu.memory_space<vmem>>) attributes {dimension_semantics = [#tpu.dimension_semantics<parallel>], iteration_bounds = array<i64: 2>, scalar_prefetch = 0 : i64, scratch_operands = 0 : i64, tpu.core_type = #tpu.core_type<tc>, window_params = [{transform_indices = @transform_0, window_bounds = array<i64: 24, 1024>}, {transform_indices = @transform_1, window_bounds = array<i64: 24, 1024>}, {transform_indices = @transform_2, window_bounds = array<i64: 24, 1024>}]} {
    %c0 = arith.constant 0 : index
    %c0_0 = arith.constant 0 : index
    %0 = vector.load %arg2[%c0, %c0_0] : memref<24x1024xf32, #tpu.memory_space<vmem>>, vector<24x1024xf32>
    %c0_1 = arith.constant 0 : index
    %c0_2 = arith.constant 0 : index
    %1 = vector.load %arg1[%c0_1, %c0_2] : memref<24x1024xf32, #tpu.memory_space<vmem>>, vector<24x1024xf32>
    %cst = arith.constant 0.999899983 : f32
    %2 = vector.broadcast %cst : f32 to vector<24x1024xf32>
    %3 = arith.mulf %2, %1 : vector<24x1024xf32>
    %cst_3 = arith.constant 9.99999974E-5 : f32
    %4 = vector.broadcast %cst_3 : f32 to vector<24x1024xf32>
    %5 = arith.mulf %4, %0 : vector<24x1024xf32>
    %6 = arith.addf %3, %5 : vector<24x1024xf32>
    %c0_4 = arith.constant 0 : index
    %c0_5 = arith.constant 0 : index
    %7 = vector.load %arg3[%c0_4, %c0_5] : memref<24x1024xf32, #tpu.memory_space<vmem>>, vector<24x1024xf32>
    tpu.vector_store %arg3[%c0_4, %c0_5], %6 {strides = array<i32>} : memref<24x1024xf32, #tpu.memory_space<vmem>>, vector<24x1024xf32>,
    return
  }
  func.func @transform_0(%arg0: i32) -> (i32, i32) {
    %c0_i32 = arith.constant 0 : i32
    %c0_i32_0 = arith.constant 0 : i32
    return %arg0, %c0_i32 : i32, i32
  }
  func.func @transform_1(%arg0: i32) -> (i32, i32) {
    %c0_i32 = arith.constant 0 : i32
    %c0_i32_0 = arith.constant 0 : i32
    return %arg0, %c0_i32 : i32, i32
  }
  func.func @transform_2(%arg0: i32) -> (i32, i32) {
    %c0_i32 = arith.constant 0 : i32
    %c0_i32_0 = arith.constant 0 : i32
    return %arg0, %c0_i32 : i32, i32
  }
}

</mosaic_0001>

<bundles_post_ra>
// kernel: _ema_update_packed.1
= control target key start
LH: loop header
LB: loop body
LE: loop exit
PB: predicated region body
PF: predicated region fallthrough
CT: control target
= control target key end

     0   :  { %7 = vsyncpa [#allocation3], 0  ;;  %s995_s0 = inlined_call_operand.hbm [shape: f32[48,1024], index: 0, kind: input, shape index: {}, may-alias: {0,2}]   ;;  %s996_s1 = inlined_call_operand.hbm [shape: f32[48,1024], index: 1, kind: input, shape index: {}]   ;;  %s997_s2 = inlined_call_operand.hbm [shape: f32[48,1024], index: 2, kind: output, shape index: {}, may-alias: {0,2}]  }
   0x1   :  { %9 = vsyncpa [#allocation3 + $0x1], 0 }
   0x2   :  { %10 = vsyncpa [#allocation6], 0 }
   0x3   :  { %12 = vsyncpa [#allocation6 + $0x1], 0 }
   0x4   :  { %13 = vsyncpa [#allocation4], 0 }
   0x5   :  { %15 = vsyncpa [#allocation4 + $0x1], 0  ;;  %s695_s9 = smov 0   ;;  %s697_s10 = smov 0  }
   0x6   :  { %s699_s11 = smov 0   ;;  %s701_s12 = smov 0  }
   0x7 LB: > { %s716_s13 = sadd.s32 4294967295, %s671_s12   ;;  %s462_s14 = sadd.s32 4294967294, %s671_s12   ;;  %s671_s12 = sphi %s701_s12, %s1012_s12   ;;  %s667_s11 = sphi %s699_s11, %s1011_s11   ;;  %s663_s10 = sphi %s697_s10, %s1010_s10   ;;  %s659_s9 = sphi %s695_s9, %s1009_s9  }
   0x8   : > { %s720_s15 = sadd.s32 1, %s671_s12   ;;  %s28_s16 = sadd.s32 1, %s667_s11 }
   0x9   : > { %s25_s17 = ssub.s32 %s671_s12, %s720_s15  ;;  %p35_p0 = scmp.ne.s32.totalorder %s667_s11, %s663_s10 }
   0xa   : > { %p26_p1 = scmp.eq.s32.totalorder %s25_s17, 0  ;;  %p36_p2 = scmp.eq.s32.totalorder %s671_s12, 0 }
   0xb   : > { %p41_p3 = scmp.ne.s32.totalorder %s663_s10, %s659_s9  ;;  %p42_p4 = scmp.eq.s32.totalorder %s716_s13, 0 }
   0xc   : > { %s732_s18 = scalar_select %p26_p1, %s667_s11, %s28_s16  }
   0xd   : > { %p37_p5 = por %p36_p2, %p35_p0  ;;  %p734_p6 = por %p42_p4, %p41_p3 }
   0xe   : > { %p91_p7 = scmp.eq.s32.totalorder %s716_s13, 1  ;;  %p97_p8 = scmp.eq.s32.totalorder %s462_s14, 1 }
   0xf   : > { %s1000_s19 = scalar_select %p734_p6, 1, 0 }
  0x10   : > { %p503_p10 = scmp.lt.s32.totalorder %s671_s12, 2  ;;  %p741_p11 = por %p91_p7, %p35_p0 }
  0x11   : > { %p745_p12 = por %p97_p8, %p41_p3  ;;  %s750_s22 = sand.u32 1, %s667_s11  }
  0x12   : > { %s1001_s20 = scalar_select %p741_p11, 1, 0 }
  0x13   : > { %s1002_s21 = scalar_select %p745_p12, 1, 0 }
  0x14   : > { %s480_s23 = smul.u32 3072, %s671_s12  ;;  %p761_p13 = pnand %p503_p10, %p37_p5 }
  0x15   : > { %s483_s24 = smul.u32 192, %s750_s22  ;;  %s118_s3 = scalar_lea.sflag [#allocation3], %s750_s22 }
  0x16   : > { %s759_s27 = scalar_lea.hbm %s995_s0, %s480_s23  ;;  %p543_p1 = pneg %p761_p13 }
  0x17   : > { %s121_s29 = scalar_lea.vmem [#allocation2], %s483_s24  ;;  %s541_s4 = scalar_lea.hbm %s759_s27, 3072 }
  0x18   : > { %s129_s30 = sshll.u32 %s121_s29, 4  ;;  %p542_p0 = scmp.ne.s32.totalorder %s759_s27, %s541_s4  ;;  %s767_s30 = int_to_ptr.vmem [resolvable:$true] %s129_s30 }
  0x19   : > { %s546_s7 = scalar_lea.hbm %s995_s0, 6144  ;;  %p547_p4 = scmp.lt.u32.totalorder %s759_s27, %s995_s0 }
  0x1a   : > { %p544_p2 = pnand %p543_p1, %p542_p0  ;;  %p548_p5 = scmp.lt.u32.totalorder %s546_s7, %s541_s4 }
  0x1b   : > { %p550_p8 = scmp.lt.u32.totalorder %s541_s4, %s759_s27 }
  0x1c   : > { %p545_p3 = pneg %p544_p2  ;;  %p549_p7 = por %p548_p5, %p547_p4 }
  0x1e   : > { %p551_p10 = por %p550_p8, %p549_p7 }
  0x20   : > { %p552_p9 = pnand %p551_p10, %p545_p3 }
  0x22   : > { %555 = shalt.err (!%p552_p9)
}
  0x23   : > { %s556_s16 = scalar_lea.vmem %s767_s30, 3072  ;;  %s673_s17 = smov [#allocation2]  }
  0x24   : > { %p557_p0 = scmp.ne.s32.totalorder %s767_s30, %s556_s16  ;;  %s561_s25 = sshll.u32 %s673_s17, 4  ;;  %s562_s25 = int_to_ptr.vmem [resolvable:$false] %s561_s25 }
  0x25   : > { %s563_s26 = scalar_lea.vmem %s562_s25, 6144  ;;  %p564_p11 = scmp.lt.s32.totalorder %s767_s30, %s562_s25 }
  0x26   : > { %p559_p2 = pnand %p557_p0, %p543_p1  ;;  %p565_p4 = scmp.lt.s32.totalorder %s563_s26, %s556_s16 }
  0x28   : > { %p560_p12 = pneg %p559_p2  ;;  %p566_p5 = por %p565_p4, %p564_p11 }
  0x2a   : > { %p567_p7 = pnand %p566_p5, %p560_p12 }
  0x2c   : > { %570 = shalt.err (!%p567_p7)
}
  0x2d   : > { %s674_s29 = smov 1024   ;;  %s675_s4 = smov 64  }
  0x2e   : > { %495 = dma.hbm_to_vmem [thread:$0]  (!%p761_p13), %s759_s27, 3072, %s767_s30, %s118_s3, %s674_s29, %s674_s29, %s675_s4  }
  0x2f   : > { %p469_p9 = scmp.ge.s32.totalorder %s671_s12, 1  ;;  %p159_p11 = scmp.lt.s32.totalorder %s671_s12, 3 }
  0x30   : > { %s811_s8 = scalar_lea.hbm %s996_s1, %s480_s23  ;;  %s143_s14 = scalar_lea.vmem [#allocation5], %s483_s24 }
  0x31   : > { %p802_p12 = pnand %p469_p9, %p159_p11  ;;  %s151_s16 = sshll.u32 %s143_s14, 4  ;;  %s815_s16 = int_to_ptr.vmem [resolvable:$true] %s151_s16 }
  0x32   : > { %s140_s27 = scalar_lea.sflag [#allocation6], %s750_s22  ;;  %s571_s30 = scalar_lea.hbm %s811_s8, 3072 }
  0x33   : > { %p572_p3 = scmp.ne.s32.totalorder %s811_s8, %s571_s30  ;;  %s576_s23 = scalar_lea.hbm %s996_s1, 6144 }
  0x34   : > { %p577_p0 = scmp.lt.u32.totalorder %s811_s8, %s996_s1  ;;  %p578_p2 = scmp.lt.u32.totalorder %s576_s23, %s571_s30 }
  0x35   : > { %p574_p8 = pnand %p572_p3, %p543_p1  ;;  %p580_p5 = scmp.lt.u32.totalorder %s571_s30, %s811_s8 }
  0x36   : > { %p579_p4 = por %p578_p2, %p577_p0 }
  0x37   : > { %p575_p10 = pneg %p574_p8 }
  0x38   : > { %p581_p7 = por %p580_p5, %p579_p4 }
  0x3a   : > { %p582_p9 = pnand %p581_p7, %p575_p10 }
  0x3c   : > { %585 = shalt.err (!%p582_p9)
}
  0x3d   : > { %s586_s24 = scalar_lea.vmem %s815_s16, 3072  ;;  %s676_s6 = smov [#allocation5]  }
  0x3e   : > { %p587_p11 = scmp.ne.s32.totalorder %s815_s16, %s586_s24  ;;  %s591_s7 = sshll.u32 %s676_s6, 4  ;;  %s592_s7 = int_to_ptr.vmem [resolvable:$false] %s591_s7 }
  0x3f   : > { %s593_s14 = scalar_lea.vmem %s592_s7, 6144  ;;  %p594_p6 = scmp.lt.s32.totalorder %s815_s16, %s592_s7 }
  0x40   : > { %p589_p3 = pnand %p587_p11, %p543_p1  ;;  %p595_p0 = scmp.lt.s32.totalorder %s593_s14, %s586_s24 }
  0x42   : > { %p590_p8 = pneg %p589_p3  ;;  %p596_p2 = por %p595_p0, %p594_p6 }
  0x44   : > { %p597_p4 = pnand %p596_p2, %p590_p8 }
  0x46   : > { %600 = shalt.err (!%p597_p4)
}
  0x47   : > { %498 = dma.hbm_to_vmem [thread:$0]  (!%p761_p13), %s811_s8, 3072, %s815_s16, %s140_s27, %s674_s29, %s674_s29, %s675_s4  }
  0x48   : > { %163 = sbr.rel (%p802_p12) target bundleno = 133 (0x85), region = 28  ;;  %s849_s30 = sand.u32 (!%p802_p12), 1, %s663_s10  }
  0x49   : > { %s485_s3 = smul.u32 (!%p802_p12), 192, %s849_s30  ;;  %s166_s17 = scalar_lea.sflag (!%p802_p12), [#allocation3], %s849_s30 }
  0x4a   : > { %p1005_p6 = scmp.ne.s32.totalorder (!%p802_p12), %s1000_s19, 0 }
  0x4b   : > { %s853_s28 = scalar_lea.vmem (!%p802_p12), [#allocation2], %s485_s3 }
  0x4f   : > { %646 = dma.done.wait (%p1005_p6), %s166_s17, 3072  }
  0x50   : > { %648 = vsyncadd (%p1005_p6), %s166_s17, 4294964224  ;;  %s175_s22 = scalar_lea.sflag [#allocation6], %s849_s30  ;;  %s860_s29 = scalar_lea.vmem [#allocation5], %s485_s3 }
  0x51   : > { %650 = dma.done.wait (%p1005_p6), %s175_s22, 3072  }
  0x52   : > { %652 = vsyncadd (%p1005_p6), %s175_s22, 4294964224  ;;  %v207_v0 = vld [vmem:[%s860_s29] sm:$0xff]  ;;  %v208_v2 = vld [vmem:[%s860_s29 + $0x8] sm:$0xff]  ;;  %s482_s4 = smul.u32 3072, %s716_s13  ;;  %s870_s5 = scalar_lea.vmem [#allocation7], %s485_s3 }
  0x53   : > { %v231_v1 = vld [vmem:[%s853_s28] sm:$0xff]  ;;  %s366_s8 = sshll.u32 %s870_s5, 4  ;;  %v279_v4 = vmul.f32 0.0001, %v207_v0  ;;  %v232_v5 = vld [vmem:[%s853_s28 + $0x8] sm:$0xff]  ;;  %v209_v6 = vld [vmem:[%s860_s29 + $0x10] sm:$0xff]  ;;  %s941_s8 = int_to_ptr.vmem [resolvable:$true] %s366_s8 }
  0x54   : > { %v255_v3 = vmul.f32 0.9999, %v231_v1  ;;  %v256_v7 = vmul.f32 0.9999, %v232_v5  ;;  %v280_v8 = vmul.f32 0.0001, %v208_v2  ;;  %s949_s27 = scalar_lea.hbm %s997_s2, %s482_s4 }
  0x55   : > { %v233_v9 = vld [vmem:[%s853_s28 + $0x10] sm:$0xff]  ;;  %v210_v10 = vld [vmem:[%s860_s29 + $0x18] sm:$0xff]  ;;  %v281_v13 = vmul.f32 0.0001, %v209_v6  ;;  %v211_v15 = vld [vmem:[%s860_s29 + $0x20] sm:$0xff]  ;;  %s352_s23 = scalar_lea.sflag [#allocation4], %s849_s30 }
  0x56   : > { %v303_v11 = vadd.f32 %v279_v4, %v255_v3  ;;  %v257_v12 = vmul.f32 0.9999, %v233_v9  ;;  %v234_v14 = vld [vmem:[%s853_s28 + $0x18] sm:$0xff]  ;;  %v304_v16 = vadd.f32 %v280_v8, %v256_v7  ;;  %v282_v18 = vmul.f32 0.0001, %v210_v10  ;;  %v235_v19 = vld [vmem:[%s853_s28 + $0x20] sm:$0xff] }
  0x57   : > { %v258_v17 = vmul.f32 0.9999, %v234_v14  ;;  %v212_v20 = vld [vmem:[%s860_s29 + $0x28] sm:$0xff]  ;;  %v259_v22 = vmul.f32 0.9999, %v235_v19  ;;  %v213_v25 = vld [vmem:[%s860_s29 + $0x30] sm:$0xff] }
  0x58   : > { %327 = vst [vmem:[%s870_s5] sm:$0xff] %v303_v11  ;;  %v305_v21 = vadd.f32 %v281_v13, %v257_v12  ;;  %v283_v23 = vmul.f32 0.0001, %v211_v15  ;;  %v236_v24 = vld [vmem:[%s853_s28 + $0x28] sm:$0xff]  ;;  %328 = vst [vmem:[%s870_s5 + $0x8] sm:$0xff] %v304_v16  ;;  %v284_v28 = vmul.f32 0.0001, %v212_v20 }
  0x59   : > { %v306_v26 = vadd.f32 %v282_v18, %v258_v17  ;;  %v260_v27 = vmul.f32 0.9999, %v236_v24  ;;  %v237_v29 = vld [vmem:[%s853_s28 + $0x30] sm:$0xff]  ;;  %v214_v30 = vld [vmem:[%s860_s29 + $0x38] sm:$0xff]  ;;  %v285_v33 = vmul.f32 0.0001, %v213_v25 }
  0x5a   : > { %329 = vst [vmem:[%s870_s5 + $0x10] sm:$0xff] %v305_v21  ;;  %v307_v31 = vadd.f32 %v283_v23, %v259_v22  ;;  %v261_v32 = vmul.f32 0.9999, %v237_v29  ;;  %v238_v34 = vld [vmem:[%s853_s28 + $0x38] sm:$0xff]  ;;  %v215_v35 = vld [vmem:[%s860_s29 + $0x40] sm:$0xff]  ;;  %v216_v40 = vld [vmem:[%s860_s29 + $0x48] sm:$0xff] }
  0x5b   : > { %330 = vst [vmem:[%s870_s5 + $0x18] sm:$0xff] %v306_v26  ;;  %v308_v36 = vadd.f32 %v284_v28, %v260_v27  ;;  %v262_v37 = vmul.f32 0.9999, %v238_v34  ;;  %v286_v38 = vmul.f32 0.0001, %v214_v30  ;;  %v239_v39 = vld [vmem:[%s853_s28 + $0x40] sm:$0xff] }
  0x5c   : > { %331 = vst [vmem:[%s870_s5 + $0x20] sm:$0xff] %v307_v31  ;;  %v309_v41 = vadd.f32 %v285_v33, %v261_v32  ;;  %v263_v42 = vmul.f32 0.9999, %v239_v39  ;;  %v287_v43 = vmul.f32 0.0001, %v215_v35  ;;  %v240_v44 = vld [vmem:[%s853_s28 + $0x48] sm:$0xff] }
  0x5d   : > { %v217_v45 = vld [vmem:[%s860_s29 + $0x50] sm:$0xff]  ;;  %332 = vst [vmem:[%s870_s5 + $0x28] sm:$0xff] %v308_v36  ;;  %v310_v46 = vadd.f32 %v286_v38, %v262_v37  ;;  %v264_v47 = vmul.f32 0.9999, %v240_v44  ;;  %v288_v48 = vmul.f32 0.0001, %v216_v40 }
  0x5e   : > { %v241_v49 = vld [vmem:[%s853_s28 + $0x50] sm:$0xff]  ;;  %v218_v50 = vld [vmem:[%s860_s29 + $0x58] sm:$0xff]  ;;  %333 = vst [vmem:[%s870_s5 + $0x30] sm:$0xff] %v309_v41  ;;  %v311_v51 = vadd.f32 %v287_v43, %v263_v42  ;;  %v289_v53 = vmul.f32 0.0001, %v217_v45  ;;  %v219_v55 = vld [vmem:[%s860_s29 + $0x60] sm:$0xff] }
  0x5f   : > { %v265_v52 = vmul.f32 0.9999, %v241_v49  ;;  %v242_v54 = vld [vmem:[%s853_s28 + $0x58] sm:$0xff]  ;;  %334 = vst [vmem:[%s870_s5 + $0x38] sm:$0xff] %v310_v46  ;;  %v312_v56 = vadd.f32 %v288_v48, %v264_v47  ;;  %v290_v58 = vmul.f32 0.0001, %v218_v50 }
  0x60   : > { %v266_v57 = vmul.f32 0.9999, %v242_v54  ;;  %v243_v59 = vld [vmem:[%s853_s28 + $0x60] sm:$0xff]  ;;  %v220_v60 = vld [vmem:[%s860_s29 + $0x68] sm:$0xff]  ;;  %335 = vst [vmem:[%s870_s5 + $0x40] sm:$0xff] %v311_v51  ;;  %v221_v1 = vld [vmem:[%s860_s29 + $0x70] sm:$0xff] }
  0x61   : > { %v313_v61 = vadd.f32 %v289_v53, %v265_v52  ;;  %v267_v62 = vmul.f32 0.9999, %v243_v59  ;;  %v291_v63 = vmul.f32 0.0001, %v219_v55  ;;  %v244_v0 = vld [vmem:[%s853_s28 + $0x68] sm:$0xff]  ;;  %336 = vst [vmem:[%s870_s5 + $0x48] sm:$0xff] %v312_v56 }
  0x62   : > { %v314_v2 = vadd.f32 %v290_v58, %v266_v57  ;;  %v268_v3 = vmul.f32 0.9999, %v244_v0  ;;  %v292_v4 = vmul.f32 0.0001, %v220_v60  ;;  %v245_v5 = vld [vmem:[%s853_s28 + $0x70] sm:$0xff]  ;;  %v222_v6 = vld [vmem:[%s860_s29 + $0x78] sm:$0xff] }
  0x63   : > { %337 = vst [vmem:[%s870_s5 + $0x50] sm:$0xff] %v313_v61  ;;  %v315_v7 = vadd.f32 %v291_v63, %v267_v62  ;;  %v269_v8 = vmul.f32 0.9999, %v245_v5  ;;  %v293_v9 = vmul.f32 0.0001, %v221_v1  ;;  %v246_v10 = vld [vmem:[%s853_s28 + $0x78] sm:$0xff] }
  0x64   : > { %v223_v11 = vld [vmem:[%s860_s29 + $0x80] sm:$0xff]  ;;  %338 = vst [vmem:[%s870_s5 + $0x58] sm:$0xff] %v314_v2  ;;  %v316_v12 = vadd.f32 %v292_v4, %v268_v3  ;;  %v270_v13 = vmul.f32 0.9999, %v246_v10  ;;  %v294_v14 = vmul.f32 0.0001, %v222_v6 }
  0x65   : > { %v247_v15 = vld [vmem:[%s853_s28 + $0x80] sm:$0xff]  ;;  %v224_v16 = vld [vmem:[%s860_s29 + $0x88] sm:$0xff]  ;;  %339 = vst [vmem:[%s870_s5 + $0x60] sm:$0xff] %v315_v7  ;;  %v317_v17 = vadd.f32 %v293_v9, %v269_v8  ;;  %v295_v19 = vmul.f32 0.0001, %v223_v11  ;;  %v225_v21 = vld [vmem:[%s860_s29 + $0x90] sm:$0xff] }
  0x66   : > { %v271_v18 = vmul.f32 0.9999, %v247_v15  ;;  %v248_v20 = vld [vmem:[%s853_s28 + $0x88] sm:$0xff]  ;;  %340 = vst [vmem:[%s870_s5 + $0x68] sm:$0xff] %v316_v12  ;;  %v318_v22 = vadd.f32 %v294_v14, %v270_v13  ;;  %v296_v24 = vmul.f32 0.0001, %v224_v16 }
  0x67   : > { %v272_v23 = vmul.f32 0.9999, %v248_v20  ;;  %v249_v25 = vld [vmem:[%s853_s28 + $0x90] sm:$0xff]  ;;  %v226_v26 = vld [vmem:[%s860_s29 + $0x98] sm:$0xff]  ;;  %341 = vst [vmem:[%s870_s5 + $0x70] sm:$0xff] %v317_v17  ;;  %v227_v31 = vld [vmem:[%s860_s29 + $0xa0] sm:$0xff] }
  0x68   : > { %v319_v27 = vadd.f32 %v295_v19, %v271_v18  ;;  %v273_v28 = vmul.f32 0.9999, %v249_v25  ;;  %v297_v29 = vmul.f32 0.0001, %v225_v21  ;;  %v250_v30 = vld [vmem:[%s853_s28 + $0x98] sm:$0xff]  ;;  %342 = vst [vmem:[%s870_s5 + $0x78] sm:$0xff] %v318_v22 }
  0x69   : > { %v320_v32 = vadd.f32 %v296_v24, %v272_v23  ;;  %v274_v33 = vmul.f32 0.9999, %v250_v30  ;;  %v298_v34 = vmul.f32 0.0001, %v226_v26  ;;  %v251_v35 = vld [vmem:[%s853_s28 + $0xa0] sm:$0xff]  ;;  %v228_v36 = vld [vmem:[%s860_s29 + $0xa8] sm:$0xff] }
  0x6a   : > { %343 = vst [vmem:[%s870_s5 + $0x80] sm:$0xff] %v319_v27  ;;  %v321_v37 = vadd.f32 %v297_v29, %v273_v28  ;;  %v275_v38 = vmul.f32 0.9999, %v251_v35  ;;  %v299_v39 = vmul.f32 0.0001, %v227_v31  ;;  %v252_v40 = vld [vmem:[%s853_s28 + $0xa8] sm:$0xff] }
  0x6b   : > { %v229_v41 = vld [vmem:[%s860_s29 + $0xb0] sm:$0xff]  ;;  %344 = vst [vmem:[%s870_s5 + $0x88] sm:$0xff] %v320_v32  ;;  %v322_v42 = vadd.f32 %v298_v34, %v274_v33  ;;  %v276_v43 = vmul.f32 0.9999, %v252_v40  ;;  %v300_v44 = vmul.f32 0.0001, %v228_v36 }
  0x6c   : > { %v253_v45 = vld [vmem:[%s853_s28 + $0xb0] sm:$0xff]  ;;  %v230_v46 = vld [vmem:[%s860_s29 + $0xb8] sm:$0xff]  ;;  %345 = vst [vmem:[%s870_s5 + $0x90] sm:$0xff] %v321_v37  ;;  %v323_v47 = vadd.f32 %v299_v39, %v275_v38  ;;  %v301_v49 = vmul.f32 0.0001, %v229_v41  ;;  %s601_s25 = scalar_lea.vmem %s941_s8, 3072 }
  0x6d   : > { %v277_v48 = vmul.f32 0.9999, %v253_v45  ;;  %v254_v50 = vld [vmem:[%s853_s28 + $0xb8] sm:$0xff]  ;;  %346 = vst [vmem:[%s870_s5 + $0x98] sm:$0xff] %v322_v42  ;;  %v324_v51 = vadd.f32 %v300_v44, %v276_v43  ;;  %v302_v53 = vmul.f32 0.0001, %v230_v46  ;;  %p602_p13 = scmp.ne.s32.totalorder %s941_s8, %s601_s25 }
  0x6e   : > { %v278_v52 = vmul.f32 0.9999, %v254_v50  ;;  %347 = vst [vmem:[%s870_s5 + $0xa0] sm:$0xff] %v323_v47  ;;  %p1006_p1 = scmp.ne.s32.totalorder %s1001_s20, 0  ;;  %s677_s26 = smov [#allocation7]  }
  0x6f   : > { %v325_v54 = vadd.f32 %v301_v49, %v277_v48  ;;  %348 = vst [vmem:[%s870_s5 + $0xa8] sm:$0xff] %v324_v51  ;;  %s605_s24 = sshll.u32 %s677_s26, 4  ;;  %s606_s24 = int_to_ptr.vmem [resolvable:$false] %s605_s24 }
  0x70   : > { %v326_v55 = vadd.f32 %v302_v53, %v278_v52  ;;  %p603_p12 = pnand %p602_p13, %p1006_p1  ;;  %s607_s6 = scalar_lea.vmem %s606_s24, 6144 }
  0x71   : > { %349 = vst [vmem:[%s870_s5 + $0xb0] sm:$0xff] %v325_v54  ;;  %p608_p5 = scmp.lt.s32.totalorder %s941_s8, %s606_s24  ;;  %p609_p7 = scmp.lt.s32.totalorder %s607_s6, %s601_s25 }
  0x72   : > { %350 = vst [vmem:[%s870_s5 + $0xb8] sm:$0xff] %v326_v55  ;;  %p604_p10 = pneg %p603_p12 }
  0x73   : > { %p610_p9 = por %p609_p7, %p608_p5 }
  0x75   : > { %p611_p11 = pnand %p610_p9, %p604_p10 }
  0x77   : > { %614 = shalt.err (!%p611_p11)
}
  0x78   : > { %s615_s13 = scalar_lea.hbm %s949_s27, 3072  ;;  %s619_s3 = scalar_lea.hbm %s997_s2, 6144 }
  0x79   : > { %p616_p3 = scmp.ne.s32.totalorder %s949_s27, %s615_s13  ;;  %p620_p2 = scmp.lt.u32.totalorder %s949_s27, %s997_s2 }
  0x7a   : > { %p621_p4 = scmp.lt.u32.totalorder %s619_s3, %s615_s13  ;;  %p623_p13 = scmp.lt.u32.totalorder %s615_s13, %s949_s27 }
  0x7b   : > { %p617_p8 = pnand %p616_p3, %p1006_p1 }
  0x7c   : > { %p622_p6 = por %p621_p4, %p620_p2 }
  0x7d   : > { %p618_p0 = pneg %p617_p8 }
  0x7e   : > { %p624_p12 = por %p623_p13, %p622_p6 }
  0x80   : > { %p625_p10 = pnand %p624_p12, %p618_p0 }
  0x82   : > { %628 = shalt.err (!%p625_p10)
}
  0x83   : > { %s678_s22 = smov 1024   ;;  %s679_s29 = smov 64  }
  0x84   : > { %490 = dma.vmem_to_hbm [thread:$0]  (%p1006_p1), %s941_s8, 3072, %s949_s27, %s352_s23, %s678_s22, %s678_s22, %s679_s29  }
  0x85 PF: > { %s381_s4 = sand.u32 1, %s659_s9   ;;  %p1007_p5 = scmp.ne.s32.totalorder %s1002_s21, 0 }
  0x86   : > { %p1008_p7 = scmp.ge.s32.totalorder %s671_s12, 2  ;;  %s382_s5 = scalar_lea.sflag [#allocation4], %s381_s4 }
  0x88   : > { %p500_p9 = pnand %p1008_p7, %p1007_p5 }
  0x8a   : > { %654 = dma.done.wait (!%p500_p9), %s382_s5, 3072  }
  0x8b   : > { %656 = vsyncadd (!%p500_p9), %s382_s5, 4294964224  ;;  %p18_p11 = scmp.ge.s32.totalorder %s720_s15, 4   ;;  %s1009_s9 = smov %s663_s10 }
  0x8c   : > { %s1010_s10 = smov %s667_s11  ;;  %s1011_s11 = smov %s732_s18 }
  0x8d   : > { %s1012_s12 = smov %s720_s15  ;;  %20 = sbr.rel (!%p18_p11) target bundleno = 7 (0x7), region = 86 }
  0x94   :  { %387 = vsyncpa [#allocation3], 1 }
  0x95   :  { %389 = vsyncpa [#allocation3 + $0x1], 1 }
  0x96   :  { %390 = vsyncpa [#allocation6], 1 }
  0x97   :  { %392 = vsyncpa [#allocation6 + $0x1], 1 }
  0x98   :  { %393 = vsyncpa [#allocation4], 1 }
  0x99   :  { %395 = vsyncpa [#allocation4 + $0x1], 1 }

</bundles_post_ra>
